<compile_context>
chip_gen: v7x
topology: tpu7x:2x2x1
jax: 0.10.0
libtpu: 0.0.40
codegen_flags: <defaults>
</compile_context>

<pallas_src>
import jax
import jax.numpy as jnp
from jax import lax
from jax.experimental import pallas as pl
from jax.experimental.pallas import tpu as pltpu

INPUT = 2            # LSTM input features
HIDDEN = 64          # LSTM hidden size
OUT = 5              # head output size

B_PAD = 8            # pad batch to a full sublane tile
IN_PAD = 8           # pad input features to one sublane tile (was 128)
GATES = 4 * HIDDEN   # 256: contiguous gate layout [i|f|g|o], no lane padding
OUT_PAD = 128        # pad head output to a full lane tile (lane-dense store)


def lstm_head_kernel(x_ref, wih_ref, whh_ref, b_ref, wout_ref, bout_ref,
                     out_ref, xw_ref):
    """Single-invocation kernel: full LSTM recurrence + Linear head.

    x_ref:    (T*B_PAD, IN_PAD)   bf16  VMEM  (time-major, batch padded to 8)
    wih_ref:  (IN_PAD,  GATES)    bf16  VMEM
    whh_ref:  (HIDDEN,  GATES)    bf16  VMEM
    b_ref:    (1,       GATES)    f32   VMEM  (b_ih + b_hh)
    wout_ref: (HIDDEN,  OUT_PAD)  bf16  VMEM
    bout_ref: (1,       OUT_PAD)  f32   VMEM
    out_ref:  (B_PAD,   OUT_PAD)  f32   VMEM
    xw_ref:   (T*B_PAD, GATES)    f32   VMEM scratch (hoisted input projection)
    """
    T = x_ref.shape[0] // B_PAD  # compile-time constant

    # (1) Input projection hoisted off the recurrence: one batched MXU pass over
    #     all T timesteps, bias folded in.  Written to an explicit VMEM scratch
    #     so it is NOT held live in vregs across the unrolled loop (the compiler
    #     would otherwise spill it with its own store/load traffic).
    xw_ref[...] = (
        jnp.dot(x_ref[...], wih_ref[...], preferred_element_type=jnp.float32)
        + b_ref[...])

    # (2) Recurrent weight loaded once (bf16) and reused by every unrolled step.
    w_hh = whh_ref[...]                                     # (HIDDEN, GATES)

    # (3) h / c carried as values; tight 64-lane arrays, no padding lanes.
    h = jnp.zeros((B_PAD, HIDDEN), jnp.float32)
    c = jnp.zeros((B_PAD, HIDDEN), jnp.float32)

    # (4) Full static unroll: T is small and fixed.  (Once T grows past a few
    #     dozen, switch to lax.fori_loop with a small unroll factor.)
    # NOTE: W_hh is loop-invariant.  If bundle dumps show it being re-pushed into
    # the MXU every step, switch to pltpu.matmul_push_rhs once before the loop +
    # pltpu.matmul_acc_lhs / matmul_pop per step (weight-stationary recurrence).
    # Left as jnp.dot here: with bf16 operands and N=256 the re-push cost is
    # small at T=8 and the explicit MXU path is generation-specific (MRF vs MRB).
    for t in range(T):
        x_t = xw_ref[pl.ds(t * B_PAD, B_PAD), :]            # one sublane tile
        gates = x_t + jnp.dot(h.astype(jnp.bfloat16), w_hh,
                              preferred_element_type=jnp.float32)
        # Gate math stays f32 (v5e has no bf16 VPU/EUP).
        i = jax.nn.sigmoid(gates[:, 0 * HIDDEN:1 * HIDDEN])
        f = jax.nn.sigmoid(gates[:, 1 * HIDDEN:2 * HIDDEN])
        g = jnp.tanh(gates[:, 2 * HIDDEN:3 * HIDDEN])
        o = jax.nn.sigmoid(gates[:, 3 * HIDDEN:4 * HIDDEN])
        c = f * c + i * g
        h = o * jnp.tanh(c)

    # (5) Lane-dense head: unmasked (8,128) store; real result lives in [:, :OUT].
    out_ref[...] = (
        jnp.dot(h.astype(jnp.bfloat16), wout_ref[...],
                preferred_element_type=jnp.float32)
        + bout_ref[...])


def rnn_forward(x_btf, kp):
    """x_btf: (B, T, INPUT) f32 (batch_first, as PyTorch) -> (1, B, OUT) f32."""
    B, T, F = x_btf.shape
    assert F == INPUT and B <= B_PAD

    # Layout plumbing only: time-major, batch padded to 8, features padded to 8.
    # (Up to 8 independent sequences can be packed into the batch dim for free.)
    x_tbf = jnp.transpose(x_btf, (1, 0, 2))                          # (T, B, F)
    x_pad = jnp.zeros((T, B_PAD, IN_PAD), jnp.bfloat16)
    x_pad = x_pad.at[:, :B, :F].set(x_tbf.astype(jnp.bfloat16))
    x_flat = x_pad.reshape(T * B_PAD, IN_PAD)

    # NOTE: for very large T, stream x / chunk the xw scratch (grid axis on T or
    # pltpu.emit_pipeline) and set vmem_limit_bytes explicitly — matters first on
    # v7x (64 MiB VMEM).  For batch > 8 / many packed sequences, add a leading
    # batch-tile grid axis with dimension_semantics=("parallel",) so v7x's second
    # TensorCore is used.  Not needed at these sizes.
    out = pl.pallas_call(
        lstm_head_kernel,
        out_shape=jax.ShapeDtypeStruct((B_PAD, OUT_PAD), jnp.float32),
        in_specs=[pl.BlockSpec(memory_space=pltpu.MemorySpace.VMEM)] * 6,
        out_specs=pl.BlockSpec(memory_space=pltpu.MemorySpace.VMEM),
        scratch_shapes=[pltpu.VMEM((T * B_PAD, GATES), jnp.float32)],
    )(x_flat, kp["w_ih"], kp["w_hh"], kp["b"], kp["w_out"], kp["b_out"])

    # PyTorch: h_n has shape (num_layers=1, B, H) -> Linear gives (1, B, OUT).
    return out[None, :B, :OUT]


# ----------------------------- parameter prep --------------------------------

def make_kernel_params(p):
    """PyTorch-shaped f32 params -> transposed / padded / bf16 kernel params."""
    w_ih_t = jnp.transpose(p["w_ih"])                        # (INPUT, 4H)
    w_ih = (jnp.zeros((IN_PAD, GATES), jnp.bfloat16)
              .at[:INPUT, :].set(w_ih_t.astype(jnp.bfloat16)))       # (8, 256)
    w_hh = jnp.transpose(p["w_hh"]).astype(jnp.bfloat16)             # (64, 256)
    b = (p["b_ih"] + p["b_hh"])[None, :].astype(jnp.float32)         # (1, 256)
    w_out_t = jnp.transpose(p["w_out"])                              # (H, OUT)
    w_out = (jnp.zeros((HIDDEN, OUT_PAD), jnp.bfloat16)
               .at[:, :OUT].set(w_out_t.astype(jnp.bfloat16)))       # (64, 128)
    b_out = (jnp.zeros((1, OUT_PAD), jnp.float32)
               .at[0, :OUT].set(p["b_out"]))                         # (1, 128)
    return {"w_ih": w_ih, "w_hh": w_hh, "b": b, "w_out": w_out, "b_out": b_out}


def init_torch_params(key):
    """PyTorch-shaped params with U(-1/sqrt(H), 1/sqrt(H)) init, gate order [i,f,g,o]."""
    ks = jax.random.split(key, 6)
    bound = 1.0 / (HIDDEN ** 0.5)
    u = lambda k, s: jax.random.uniform(k, s, jnp.float32, -bound, bound)
    return {
        "w_ih": u(ks[0], (4 * HIDDEN, INPUT)),
        "w_hh": u(ks[1], (4 * HIDDEN, HIDDEN)),
        "b_ih": u(ks[2], (4 * HIDDEN,)),
        "b_hh": u(ks[3], (4 * HIDDEN,)),
        "w_out": u(ks[4], (OUT, HIDDEN)),
        "b_out": u(ks[5], (OUT,)),
    }


def rnn_forward_ref(x_btf, p):
    """Pure-JAX f32 reference (unpadded) for correctness checking."""
    w_ih = jnp.transpose(p["w_ih"])
    w_hh = jnp.transpose(p["w_hh"])
    b = p["b_ih"] + p["b_hh"]
    w_out = jnp.transpose(p["w_out"])
    B = x_btf.shape[0]
    h = jnp.zeros((B, HIDDEN), jnp.float32)
    c = jnp.zeros((B, HIDDEN), jnp.float32)

    def step(carry, x_t):
        h, c = carry
        gates = x_t @ w_ih + h @ w_hh + b
        i = jax.nn.sigmoid(gates[:, 0:HIDDEN])
        f = jax.nn.sigmoid(gates[:, HIDDEN:2 * HIDDEN])
        g = jnp.tanh(gates[:, 2 * HIDDEN:3 * HIDDEN])
        o = jax.nn.sigmoid(gates[:, 3 * HIDDEN:4 * HIDDEN])
        c = f * c + i * g
        h = o * jnp.tanh(c)
        return (h, c), None

    (h, c), _ = lax.scan(step, (h, c), jnp.transpose(x_btf, (1, 0, 2)))
    return (h @ w_out + p["b_out"])[None, :, :]


if __name__ == "__main__":
    key = jax.random.PRNGKey(0)
    k_param, k_x = jax.random.split(key)

    B, T = 2, 8
    torch_params = init_torch_params(k_param)
    kernel_params = make_kernel_params(torch_params)
    x = jax.random.normal(k_x, (B, T, INPUT), jnp.float32)   # batch_first input

    out = jax.block_until_ready(jax.jit(rnn_forward)(x, kernel_params))
    ref = rnn_forward_ref(x, torch_params)

    assert out.shape == (1, B, OUT), out.shape
    # Tolerance loosened vs the pure-f32 reference because weights / MXU operands
    # are bf16 (f32 accumulation, f32 gate math); observed error is O(1e-3).
    assert jnp.allclose(out, ref, atol=3e-2, rtol=3e-2), (out, ref)

    print("KERNEL_OK")
</pallas_src>

<mosaic_0001>
module attributes {stable_mosaic.version = 11 : i64} {
  func.func @lstm_head_kernel(%arg0: memref<64x8xbf16, #tpu.memory_space<vmem>>, %arg1: memref<8x256xbf16, #tpu.memory_space<vmem>>, %arg2: memref<64x256xbf16, #tpu.memory_space<vmem>>, %arg3: memref<1x256xf32, #tpu.memory_space<vmem>>, %arg4: memref<64x128xbf16, #tpu.memory_space<vmem>>, %arg5: memref<1x128xf32, #tpu.memory_space<vmem>>, %arg6: memref<8x128xf32, #tpu.memory_space<vmem>>, %arg7: memref<64x256xf32, #tpu.memory_space<vmem>>) attributes {dimension_semantics = [], scalar_prefetch = 0 : i64, scratch_operands = 1 : i64, tpu.core_type = #tpu.core_type<tc>} {
    %c0 = arith.constant 0 : index
    %c0_0 = arith.constant 0 : index
    %0 = vector.load %arg0[%c0, %c0_0] : memref<64x8xbf16, #tpu.memory_space<vmem>>, vector<64x8xbf16>
    %c0_1 = arith.constant 0 : index
    %c0_2 = arith.constant 0 : index
    %1 = vector.load %arg1[%c0_1, %c0_2] : memref<8x256xbf16, #tpu.memory_space<vmem>>, vector<8x256xbf16>
    %cst = arith.constant dense<0.000000e+00> : vector<64x256xf32>
    %2 = tpu.matmul %0, %1, %cst {dimension_numbers = #tpu.dot_dimension_numbers<[1], [0], [0], [1], [0, 0, 1, 1], [], []>} : vector<64x8xbf16>, vector<8x256xbf16>, vector<64x256xf32> -> vector<64x256xf32>
    %c0_3 = arith.constant 0 : index
    %c0_4 = arith.constant 0 : index
    %3 = vector.load %arg3[%c0_3, %c0_4] : memref<1x256xf32, #tpu.memory_space<vmem>>, vector<1x256xf32>
    %4 = vector.broadcast %3 : vector<1x256xf32> to vector<64x256xf32>
    %5 = arith.addf %2, %4 : vector<64x256xf32>
    %c0_5 = arith.constant 0 : index
    %c0_6 = arith.constant 0 : index
    %6 = vector.load %arg7[%c0_5, %c0_6] : memref<64x256xf32, #tpu.memory_space<vmem>>, vector<64x256xf32>
    tpu.vector_store %arg7[%c0_5, %c0_6], %5 {strides = array<i32>} : memref<64x256xf32, #tpu.memory_space<vmem>>, vector<64x256xf32>,
    %c0_7 = arith.constant 0 : index
    %c0_8 = arith.constant 0 : index
    %7 = vector.load %arg2[%c0_7, %c0_8] : memref<64x256xbf16, #tpu.memory_space<vmem>>, vector<64x256xbf16>
    %cst_9 = arith.constant 0.000000e+00 : f32
    %8 = vector.broadcast %cst_9 : f32 to vector<8x64xf32>
    %cst_10 = arith.constant 0.000000e+00 : f32
    %9 = vector.broadcast %cst_10 : f32 to vector<8x64xf32>
    %c0_11 = arith.constant 0 : index
    %c0_12 = arith.constant 0 : index
    %10 = vector.load %arg7[%c0_11, %c0_12] : memref<64x256xf32, #tpu.memory_space<vmem>>, vector<8x256xf32>
    %11 = arith.truncf %8 : vector<8x64xf32> to vector<8x64xbf16>
    %cst_13 = arith.constant dense<0.000000e+00> : vector<8x256xf32>
    %12 = tpu.matmul %11, %7, %cst_13 {dimension_numbers = #tpu.dot_dimension_numbers<[1], [0], [0], [1], [0, 0, 1, 1], [], []>} : vector<8x64xbf16>, vector<64x256xbf16>, vector<8x256xf32> -> vector<8x256xf32>
    %13 = arith.addf %10, %12 : vector<8x256xf32>
    %14 = vector.extract_strided_slice %13 {offsets = [0, 0], sizes = [8, 64], strides = [1, 1]} : vector<8x256xf32> to vector<8x64xf32>
    %15 = arith.negf %14 : vector<8x64xf32>
    %16 = math.exp %15 : vector<8x64xf32>
    %cst_14 = arith.constant 1.000000e+00 : f32
    %17 = vector.broadcast %cst_14 : f32 to vector<8x64xf32>
    %18 = arith.addf %17, %16 : vector<8x64xf32>
    %19 = arith.divf %17, %18 : vector<8x64xf32>
    %20 = vector.extract_strided_slice %13 {offsets = [0, 64], sizes = [8, 64], strides = [1, 1]} : vector<8x256xf32> to vector<8x64xf32>
    %21 = arith.negf %20 : vector<8x64xf32>
    %22 = math.exp %21 : vector<8x64xf32>
    %cst_15 = arith.constant 1.000000e+00 : f32
    %23 = vector.broadcast %cst_15 : f32 to vector<8x64xf32>
    %24 = arith.addf %23, %22 : vector<8x64xf32>
    %25 = arith.divf %23, %24 : vector<8x64xf32>
    %26 = vector.extract_strided_slice %13 {offsets = [0, 128], sizes = [8, 64], strides = [1, 1]} : vector<8x256xf32> to vector<8x64xf32>
    %27 = math.tanh %26 : vector<8x64xf32>
    %28 = vector.extract_strided_slice %13 {offsets = [0, 192], sizes = [8, 64], strides = [1, 1]} : vector<8x256xf32> to vector<8x64xf32>
    %29 = arith.negf %28 : vector<8x64xf32>
    %30 = math.exp %29 : vector<8x64xf32>
    %cst_16 = arith.constant 1.000000e+00 : f32
    %31 = vector.broadcast %cst_16 : f32 to vector<8x64xf32>
    %32 = arith.addf %31, %30 : vector<8x64xf32>
    %33 = arith.divf %31, %32 : vector<8x64xf32>
    %34 = arith.mulf %25, %9 : vector<8x64xf32>
    %35 = arith.mulf %19, %27 : vector<8x64xf32>
    %36 = arith.addf %34, %35 : vector<8x64xf32>
    %37 = math.tanh %36 : vector<8x64xf32>
    %38 = arith.mulf %33, %37 : vector<8x64xf32>
    %c8 = arith.constant 8 : index
    %c0_17 = arith.constant 0 : index
    %39 = vector.load %arg7[%c8, %c0_17] : memref<64x256xf32, #tpu.memory_space<vmem>>, vector<8x256xf32>
    %40 = arith.truncf %38 : vector<8x64xf32> to vector<8x64xbf16>
    %cst_18 = arith.constant dense<0.000000e+00> : vector<8x256xf32>
    %41 = tpu.matmul %40, %7, %cst_18 {dimension_numbers = #tpu.dot_dimension_numbers<[1], [0], [0], [1], [0, 0, 1, 1], [], []>} : vector<8x64xbf16>, vector<64x256xbf16>, vector<8x256xf32> -> vector<8x256xf32>
    %42 = arith.addf %39, %41 : vector<8x256xf32>
    %43 = vector.extract_strided_slice %42 {offsets = [0, 0], sizes = [8, 64], strides = [1, 1]} : vector<8x256xf32> to vector<8x64xf32>
    %44 = arith.negf %43 : vector<8x64xf32>
    %45 = math.exp %44 : vector<8x64xf32>
    %cst_19 = arith.constant 1.000000e+00 : f32
    %46 = vector.broadcast %cst_19 : f32 to vector<8x64xf32>
    %47 = arith.addf %46, %45 : vector<8x64xf32>
    %48 = arith.divf %46, %47 : vector<8x64xf32>
    %49 = vector.extract_strided_slice %42 {offsets = [0, 64], sizes = [8, 64], strides = [1, 1]} : vector<8x256xf32> to vector<8x64xf32>
    %50 = arith.negf %49 : vector<8x64xf32>
    %51 = math.exp %50 : vector<8x64xf32>
    %cst_20 = arith.constant 1.000000e+00 : f32
    %52 = vector.broadcast %cst_20 : f32 to vector<8x64xf32>
    %53 = arith.addf %52, %51 : vector<8x64xf32>
    %54 = arith.divf %52, %53 : vector<8x64xf32>
    %55 = vector.extract_strided_slice %42 {offsets = [0, 128], sizes = [8, 64], strides = [1, 1]} : vector<8x256xf32> to vector<8x64xf32>
    %56 = math.tanh %55 : vector<8x64xf32>
    %57 = vector.extract_strided_slice %42 {offsets = [0, 192], sizes = [8, 64], strides = [1, 1]} : vector<8x256xf32> to vector<8x64xf32>
    %58 = arith.negf %57 : vector<8x64xf32>
    %59 = math.exp %58 : vector<8x64xf32>
    %cst_21 = arith.constant 1.000000e+00 : f32
    %60 = vector.broadcast %cst_21 : f32 to vector<8x64xf32>
    %61 = arith.addf %60, %59 : vector<8x64xf32>
    %62 = arith.divf %60, %61 : vector<8x64xf32>
    %63 = arith.mulf %54, %36 : vector<8x64xf32>
    %64 = arith.mulf %48, %56 : vector<8x64xf32>
    %65 = arith.addf %63, %64 : vector<8x64xf32>
    %66 = math.tanh %65 : vector<8x64xf32>
    %67 = arith.mulf %62, %66 : vector<8x64xf32>
    %c16 = arith.constant 16 : index
    %c0_22 = arith.constant 0 : index
    %68 = vector.load %arg7[%c16, %c0_22] : memref<64x256xf32, #tpu.memory_space<vmem>>, vector<8x256xf32>
    %69 = arith.truncf %67 : vector<8x64xf32> to vector<8x64xbf16>
    %cst_23 = arith.constant dense<0.000000e+00> : vector<8x256xf32>
    %70 = tpu.matmul %69, %7, %cst_23 {dimension_numbers = #tpu.dot_dimension_numbers<[1], [0], [0], [1], [0, 0, 1, 1], [], []>} : vector<8x64xbf16>, vector<64x256xbf16>, vector<8x256xf32> -> vector<8x256xf32>
    %71 = arith.addf %68, %70 : vector<8x256xf32>
    %72 = vector.extract_strided_slice %71 {offsets = [0, 0], sizes = [8, 64], strides = [1, 1]} : vector<8x256xf32> to vector<8x64xf32>
    %73 = arith.negf %72 : vector<8x64xf32>
    %74 = math.exp %73 : vector<8x64xf32>
    %cst_24 = arith.constant 1.000000e+00 : f32
    %75 = vector.broadcast %cst_24 : f32 to vector<8x64xf32>
    %76 = arith.addf %75, %74 : vector<8x64xf32>
    %77 = arith.divf %75, %76 : vector<8x64xf32>
    %78 = vector.extract_strided_slice %71 {offsets = [0, 64], sizes = [8, 64], strides = [1, 1]} : vector<8x256xf32> to vector<8x64xf32>
    %79 = arith.negf %78 : vector<8x64xf32>
    %80 = math.exp %79 : vector<8x64xf32>
    %cst_25 = arith.constant 1.000000e+00 : f32
    %81 = vector.broadcast %cst_25 : f32 to vector<8x64xf32>
    %82 = arith.addf %81, %80 : vector<8x64xf32>
    %83 = arith.divf %81, %82 : vector<8x64xf32>
    %84 = vector.extract_strided_slice %71 {offsets = [0, 128], sizes = [8, 64], strides = [1, 1]} : vector<8x256xf32> to vector<8x64xf32>
    %85 = math.tanh %84 : vector<8x64xf32>
    %86 = vector.extract_strided_slice %71 {offsets = [0, 192], sizes = [8, 64], strides = [1, 1]} : vector<8x256xf32> to vector<8x64xf32>
    %87 = arith.negf %86 : vector<8x64xf32>
    %88 = math.exp %87 : vector<8x64xf32>
    %cst_26 = arith.constant 1.000000e+00 : f32
    %89 = vector.broadcast %cst_26 : f32 to vector<8x64xf32>
    %90 = arith.addf %89, %88 : vector<8x64xf32>
    %91 = arith.divf %89, %90 : vector<8x64xf32>
    %92 = arith.mulf %83, %65 : vector<8x64xf32>
    %93 = arith.mulf %77, %85 : vector<8x64xf32>
    %94 = arith.addf %92, %93 : vector<8x64xf32>
    %95 = math.tanh %94 : vector<8x64xf32>
    %96 = arith.mulf %91, %95 : vector<8x64xf32>
    %c24 = arith.constant 24 : index
    %c0_27 = arith.constant 0 : index
    %97 = vector.load %arg7[%c24, %c0_27] : memref<64x256xf32, #tpu.memory_space<vmem>>, vector<8x256xf32>
    %98 = arith.truncf %96 : vector<8x64xf32> to vector<8x64xbf16>
    %cst_28 = arith.constant dense<0.000000e+00> : vector<8x256xf32>
    %99 = tpu.matmul %98, %7, %cst_28 {dimension_numbers = #tpu.dot_dimension_numbers<[1], [0], [0], [1], [0, 0, 1, 1], [], []>} : vector<8x64xbf16>, vector<64x256xbf16>, vector<8x256xf32> -> vector<8x256xf32>
    %100 = arith.addf %97, %99 : vector<8x256xf32>
    %101 = vector.extract_strided_slice %100 {offsets = [0, 0], sizes = [8, 64], strides = [1, 1]} : vector<8x256xf32> to vector<8x64xf32>
    %102 = arith.negf %101 : vector<8x64xf32>
    %103 = math.exp %102 : vector<8x64xf32>
    %cst_29 = arith.constant 1.000000e+00 : f32
    %104 = vector.broadcast %cst_29 : f32 to vector<8x64xf32>
    %105 = arith.addf %104, %103 : vector<8x64xf32>
    %106 = arith.divf %104, %105 : vector<8x64xf32>
    %107 = vector.extract_strided_slice %100 {offsets = [0, 64], sizes = [8, 64], strides = [1, 1]} : vector<8x256xf32> to vector<8x64xf32>
    %108 = arith.negf %107 : vector<8x64xf32>
    %109 = math.exp %108 : vector<8x64xf32>
    %cst_30 = arith.constant 1.000000e+00 : f32
    %110 = vector.broadcast %cst_30 : f32 to vector<8x64xf32>
    %111 = arith.addf %110, %109 : vector<8x64xf32>
    %112 = arith.divf %110, %111 : vector<8x64xf32>
    %113 = vector.extract_strided_slice %100 {offsets = [0, 128], sizes = [8, 64], strides = [1, 1]} : vector<8x256xf32> to vector<8x64xf32>
    %114 = math.tanh %113 : vector<8x64xf32>
    %115 = vector.extract_strided_slice %100 {offsets = [0, 192], sizes = [8, 64], strides = [1, 1]} : vector<8x256xf32> to vector<8x64xf32>
    %116 = arith.negf %115 : vector<8x64xf32>
    %117 = math.exp %116 : vector<8x64xf32>
    %cst_31 = arith.constant 1.000000e+00 : f32
    %118 = vector.broadcast %cst_31 : f32 to vector<8x64xf32>
    %119 = arith.addf %118, %117 : vector<8x64xf32>
    %120 = arith.divf %118, %119 : vector<8x64xf32>
    %121 = arith.mulf %112, %94 : vector<8x64xf32>
    %122 = arith.mulf %106, %114 : vector<8x64xf32>
    %123 = arith.addf %121, %122 : vector<8x64xf32>
    %124 = math.tanh %123 : vector<8x64xf32>
    %125 = arith.mulf %120, %124 : vector<8x64xf32>
    %c32 = arith.constant 32 : index
    %c0_32 = arith.constant 0 : index
    %126 = vector.load %arg7[%c32, %c0_32] : memref<64x256xf32, #tpu.memory_space<vmem>>, vector<8x256xf32>
    %127 = arith.truncf %125 : vector<8x64xf32> to vector<8x64xbf16>
    %cst_33 = arith.constant dense<0.000000e+00> : vector<8x256xf32>
    %128 = tpu.matmul %127, %7, %cst_33 {dimension_numbers = #tpu.dot_dimension_numbers<[1], [0], [0], [1], [0, 0, 1, 1], [], []>} : vector<8x64xbf16>, vector<64x256xbf16>, vector<8x256xf32> -> vector<8x256xf32>
    %129 = arith.addf %126, %128 : vector<8x256xf32>
    %130 = vector.extract_strided_slice %129 {offsets = [0, 0], sizes = [8, 64], strides = [1, 1]} : vector<8x256xf32> to vector<8x64xf32>
    %131 = arith.negf %130 : vector<8x64xf32>
    %132 = math.exp %131 : vector<8x64xf32>
    %cst_34 = arith.constant 1.000000e+00 : f32
    %133 = vector.broadcast %cst_34 : f32 to vector<8x64xf32>
    %134 = arith.addf %133, %132 : vector<8x64xf32>
    %135 = arith.divf %133, %134 : vector<8x64xf32>
    %136 = vector.extract_strided_slice %129 {offsets = [0, 64], sizes = [8, 64], strides = [1, 1]} : vector<8x256xf32> to vector<8x64xf32>
    %137 = arith.negf %136 : vector<8x64xf32>
    %138 = math.exp %137 : vector<8x64xf32>
    %cst_35 = arith.constant 1.000000e+00 : f32
    %139 = vector.broadcast %cst_35 : f32 to vector<8x64xf32>
    %140 = arith.addf %139, %138 : vector<8x64xf32>
    %141 = arith.divf %139, %140 : vector<8x64xf32>
    %142 = vector.extract_strided_slice %129 {offsets = [0, 128], sizes = [8, 64], strides = [1, 1]} : vector<8x256xf32> to vector<8x64xf32>
    %143 = math.tanh %142 : vector<8x64xf32>
    %144 = vector.extract_strided_slice %129 {offsets = [0, 192], sizes = [8, 64], strides = [1, 1]} : vector<8x256xf32> to vector<8x64xf32>
    %145 = arith.negf %144 : vector<8x64xf32>
    %146 = math.exp %145 : vector<8x64xf32>
    %cst_36 = arith.constant 1.000000e+00 : f32
    %147 = vector.broadcast %cst_36 : f32 to vector<8x64xf32>
    %148 = arith.addf %147, %146 : vector<8x64xf32>
    %149 = arith.divf %147, %148 : vector<8x64xf32>
    %150 = arith.mulf %141, %123 : vector<8x64xf32>
    %151 = arith.mulf %135, %143 : vector<8x64xf32>
    %152 = arith.addf %150, %151 : vector<8x64xf32>
    %153 = math.tanh %152 : vector<8x64xf32>
    %154 = arith.mulf %149, %153 : vector<8x64xf32>
    %c40 = arith.constant 40 : index
    %c0_37 = arith.constant 0 : index
    %155 = vector.load %arg7[%c40, %c0_37] : memref<64x256xf32, #tpu.memory_space<vmem>>, vector<8x256xf32>
    %156 = arith.truncf %154 : vector<8x64xf32> to vector<8x64xbf16>
    %cst_38 = arith.constant dense<0.000000e+00> : vector<8x256xf32>
    %157 = tpu.matmul %156, %7, %cst_38 {dimension_numbers = #tpu.dot_dimension_numbers<[1], [0], [0], [1], [0, 0, 1, 1], [], []>} : vector<8x64xbf16>, vector<64x256xbf16>, vector<8x256xf32> -> vector<8x256xf32>
    %158 = arith.addf %155, %157 : vector<8x256xf32>
    %159 = vector.extract_strided_slice %158 {offsets = [0, 0], sizes = [8, 64], strides = [1, 1]} : vector<8x256xf32> to vector<8x64xf32>
    %160 = arith.negf %159 : vector<8x64xf32>
    %161 = math.exp %160 : vector<8x64xf32>
    %cst_39 = arith.constant 1.000000e+00 : f32
    %162 = vector.broadcast %cst_39 : f32 to vector<8x64xf32>
    %163 = arith.addf %162, %161 : vector<8x64xf32>
    %164 = arith.divf %162, %163 : vector<8x64xf32>
    %165 = vector.extract_strided_slice %158 {offsets = [0, 64], sizes = [8, 64], strides = [1, 1]} : vector<8x256xf32> to vector<8x64xf32>
    %166 = arith.negf %165 : vector<8x64xf32>
    %167 = math.exp %166 : vector<8x64xf32>
    %cst_40 = arith.constant 1.000000e+00 : f32
    %168 = vector.broadcast %cst_40 : f32 to vector<8x64xf32>
    %169 = arith.addf %168, %167 : vector<8x64xf32>
    %170 = arith.divf %168, %169 : vector<8x64xf32>
    %171 = vector.extract_strided_slice %158 {offsets = [0, 128], sizes = [8, 64], strides = [1, 1]} : vector<8x256xf32> to vector<8x64xf32>
    %172 = math.tanh %171 : vector<8x64xf32>
    %173 = vector.extract_strided_slice %158 {offsets = [0, 192], sizes = [8, 64], strides = [1, 1]} : vector<8x256xf32> to vector<8x64xf32>
    %174 = arith.negf %173 : vector<8x64xf32>
    %175 = math.exp %174 : vector<8x64xf32>
    %cst_41 = arith.constant 1.000000e+00 : f32
    %176 = vector.broadcast %cst_41 : f32 to vector<8x64xf32>
    %177 = arith.addf %176, %175 : vector<8x64xf32>
    %178 = arith.divf %176, %177 : vector<8x64xf32>
    %179 = arith.mulf %170, %152 : vector<8x64xf32>
    %180 = arith.mulf %164, %172 : vector<8x64xf32>
    %181 = arith.addf %179, %180 : vector<8x64xf32>
    %182 = math.tanh %181 : vector<8x64xf32>
    %183 = arith.mulf %178, %182 : vector<8x64xf32>
    %c48 = arith.constant 48 : index
    %c0_42 = arith.constant 0 : index
    %184 = vector.load %arg7[%c48, %c0_42] : memref<64x256xf32, #tpu.memory_space<vmem>>, vector<8x256xf32>
    %185 = arith.truncf %183 : vector<8x64xf32> to vector<8x64xbf16>
    %cst_43 = arith.constant dense<0.000000e+00> : vector<8x256xf32>
    %186 = tpu.matmul %185, %7, %cst_43 {dimension_numbers = #tpu.dot_dimension_numbers<[1], [0], [0], [1], [0, 0, 1, 1], [], []>} : vector<8x64xbf16>, vector<64x256xbf16>, vector<8x256xf32> -> vector<8x256xf32>
    %187 = arith.addf %184, %186 : vector<8x256xf32>
    %188 = vector.extract_strided_slice %187 {offsets = [0, 0], sizes = [8, 64], strides = [1, 1]} : vector<8x256xf32> to vector<8x64xf32>
    %189 = arith.negf %188 : vector<8x64xf32>
    %190 = math.exp %189 : vector<8x64xf32>
    %cst_44 = arith.constant 1.000000e+00 : f32
    %191 = vector.broadcast %cst_44 : f32 to vector<8x64xf32>
    %192 = arith.addf %191, %190 : vector<8x64xf32>
    %193 = arith.divf %191, %192 : vector<8x64xf32>
    %194 = vector.extract_strided_slice %187 {offsets = [0, 64], sizes = [8, 64], strides = [1, 1]} : vector<8x256xf32> to vector<8x64xf32>
    %195 = arith.negf %194 : vector<8x64xf32>
    %196 = math.exp %195 : vector<8x64xf32>
    %cst_45 = arith.constant 1.000000e+00 : f32
    %197 = vector.broadcast %cst_45 : f32 to vector<8x64xf32>
    %198 = arith.addf %197, %196 : vector<8x64xf32>
    %199 = arith.divf %197, %198 : vector<8x64xf32>
    %200 = vector.extract_strided_slice %187 {offsets = [0, 128], sizes = [8, 64], strides = [1, 1]} : vector<8x256xf32> to vector<8x64xf32>
    %201 = math.tanh %200 : vector<8x64xf32>
    %202 = vector.extract_strided_slice %187 {offsets = [0, 192], sizes = [8, 64], strides = [1, 1]} : vector<8x256xf32> to vector<8x64xf32>
    %203 = arith.negf %202 : vector<8x64xf32>
    %204 = math.exp %203 : vector<8x64xf32>
    %cst_46 = arith.constant 1.000000e+00 : f32
    %205 = vector.broadcast %cst_46 : f32 to vector<8x64xf32>
    %206 = arith.addf %205, %204 : vector<8x64xf32>
    %207 = arith.divf %205, %206 : vector<8x64xf32>
    %208 = arith.mulf %199, %181 : vector<8x64xf32>
    %209 = arith.mulf %193, %201 : vector<8x64xf32>
    %210 = arith.addf %208, %209 : vector<8x64xf32>
    %211 = math.tanh %210 : vector<8x64xf32>
    %212 = arith.mulf %207, %211 : vector<8x64xf32>
    %c56 = arith.constant 56 : index
    %c0_47 = arith.constant 0 : index
    %213 = vector.load %arg7[%c56, %c0_47] : memref<64x256xf32, #tpu.memory_space<vmem>>, vector<8x256xf32>
    %214 = arith.truncf %212 : vector<8x64xf32> to vector<8x64xbf16>
    %cst_48 = arith.constant dense<0.000000e+00> : vector<8x256xf32>
    %215 = tpu.matmul %214, %7, %cst_48 {dimension_numbers = #tpu.dot_dimension_numbers<[1], [0], [0], [1], [0, 0, 1, 1], [], []>} : vector<8x64xbf16>, vector<64x256xbf16>, vector<8x256xf32> -> vector<8x256xf32>
    %216 = arith.addf %213, %215 : vector<8x256xf32>
    %217 = vector.extract_strided_slice %216 {offsets = [0, 0], sizes = [8, 64], strides = [1, 1]} : vector<8x256xf32> to vector<8x64xf32>
    %218 = arith.negf %217 : vector<8x64xf32>
    %219 = math.exp %218 : vector<8x64xf32>
    %cst_49 = arith.constant 1.000000e+00 : f32
    %220 = vector.broadcast %cst_49 : f32 to vector<8x64xf32>
    %221 = arith.addf %220, %219 : vector<8x64xf32>
    %222 = arith.divf %220, %221 : vector<8x64xf32>
    %223 = vector.extract_strided_slice %216 {offsets = [0, 64], sizes = [8, 64], strides = [1, 1]} : vector<8x256xf32> to vector<8x64xf32>
    %224 = arith.negf %223 : vector<8x64xf32>
    %225 = math.exp %224 : vector<8x64xf32>
    %cst_50 = arith.constant 1.000000e+00 : f32
    %226 = vector.broadcast %cst_50 : f32 to vector<8x64xf32>
    %227 = arith.addf %226, %225 : vector<8x64xf32>
    %228 = arith.divf %226, %227 : vector<8x64xf32>
    %229 = vector.extract_strided_slice %216 {offsets = [0, 128], sizes = [8, 64], strides = [1, 1]} : vector<8x256xf32> to vector<8x64xf32>
    %230 = math.tanh %229 : vector<8x64xf32>
    %231 = vector.extract_strided_slice %216 {offsets = [0, 192], sizes = [8, 64], strides = [1, 1]} : vector<8x256xf32> to vector<8x64xf32>
    %232 = arith.negf %231 : vector<8x64xf32>
    %233 = math.exp %232 : vector<8x64xf32>
    %cst_51 = arith.constant 1.000000e+00 : f32
    %234 = vector.broadcast %cst_51 : f32 to vector<8x64xf32>
    %235 = arith.addf %234, %233 : vector<8x64xf32>
    %236 = arith.divf %234, %235 : vector<8x64xf32>
    %237 = arith.mulf %228, %210 : vector<8x64xf32>
    %238 = arith.mulf %222, %230 : vector<8x64xf32>
    %239 = arith.addf %237, %238 : vector<8x64xf32>
    %240 = math.tanh %239 : vector<8x64xf32>
    %241 = arith.mulf %236, %240 : vector<8x64xf32>
    %242 = arith.truncf %241 : vector<8x64xf32> to vector<8x64xbf16>
    %c0_52 = arith.constant 0 : index
    %c0_53 = arith.constant 0 : index
    %243 = vector.load %arg4[%c0_52, %c0_53] : memref<64x128xbf16, #tpu.memory_space<vmem>>, vector<64x128xbf16>
    %cst_54 = arith.constant dense<0.000000e+00> : vector<8x128xf32>
    %244 = tpu.matmul %242, %243, %cst_54 {dimension_numbers = #tpu.dot_dimension_numbers<[1], [0], [0], [1], [0, 0, 1, 1], [], []>} : vector<8x64xbf16>, vector<64x128xbf16>, vector<8x128xf32> -> vector<8x128xf32>
    %c0_55 = arith.constant 0 : index
    %c0_56 = arith.constant 0 : index
    %245 = vector.load %arg5[%c0_55, %c0_56] : memref<1x128xf32, #tpu.memory_space<vmem>>, vector<1x128xf32>
    %246 = vector.broadcast %245 : vector<1x128xf32> to vector<8x128xf32>
    %247 = arith.addf %244, %246 : vector<8x128xf32>
    %c0_57 = arith.constant 0 : index
    %c0_58 = arith.constant 0 : index
    %248 = vector.load %arg6[%c0_57, %c0_58] : memref<8x128xf32, #tpu.memory_space<vmem>>, vector<8x128xf32>
    tpu.vector_store %arg6[%c0_57, %c0_58], %247 {strides = array<i32>} : memref<8x128xf32, #tpu.memory_space<vmem>>, vector<8x128xf32>,
    return
  }
}

</mosaic_0001>

<bundles_post_ra>
// kernel: rnn_forward.1
= control target key start
LH: loop header
LB: loop body
LE: loop exit
PB: predicated region body
PF: predicated region fallthrough
CT: control target
= control target key end

     0   :  { %11 = vsyncpa [#allocation4], 0  ;;  %s1464_s0 = inlined_call_operand.vmem [shape: bf16[64,8], index: 0, kind: input, shape index: {}]   ;;  %s1465_s1 = inlined_call_operand.hbm [shape: bf16[8,256], index: 1, kind: input, shape index: {}]   ;;  %s1466_s2 = inlined_call_operand.vmem [shape: bf16[64,256], index: 2, kind: input, shape index: {}]   ;;  %s1467_s3 = inlined_call_operand.vmem [shape: f32[1,256], index: 3, kind: input, shape index: {}]   ;;  %s1468_s4 = inlined_call_operand.hbm [shape: bf16[64,128], index: 4, kind: input, shape index: {}]   ;;  %s1469_s5 = inlined_call_operand.vmem [shape: f32[1,128], index: 5, kind: input, shape index: {}]   ;;  %s1470_s6 = inlined_call_operand.vmem [shape: f32[8,128], index: 6, kind: output, shape index: {}]  }
   0x1   :  { %12 = vsyncpa [#allocation6], 0  ;;  %s1173_s21 = smov [#allocation3]   ;;  %s1174_s23 = smov [#allocation5]  }
   0x2   :  { %s21_s22 = sshll.u32 %s1173_s21, 4  ;;  %s34_s24 = sshll.u32 %s1174_s23, 4  ;;  %s22_s22 = int_to_ptr.vmem [resolvable:$true] %s21_s22  ;;  %s1215_s24 = int_to_ptr.vmem [resolvable:$true] %s34_s24 }
   0x3   :  { %s1125_s27 = scalar_lea.hbm %s1465_s1, 128 }
   0x4   :  { %p1126_p0 = scmp.ne.s32.totalorder %s1465_s1, %s1125_s27  ;;  %p1129_p1 = scmp.lt.u32.totalorder %s1125_s27, %s1465_s1 }
   0x6   :  { %p1131_p2 = pnand %p1129_p1, %p1126_p0 }
   0x8   :  { %1134 = shalt.err (!%p1131_p2)
}
   0x9   :  { %s1135_s8 = scalar_lea.vmem %s22_s22, 128  ;;  %p1140_p4 = scmp.lt.s32.totalorder %s22_s22, %s22_s22 }
   0xa   :  { %p1136_p3 = scmp.ne.s32.totalorder %s22_s22, %s1135_s8  ;;  %p1141_p5 = scmp.lt.s32.totalorder %s1135_s8, %s1135_s8 }
   0xc   :  { %p1142_p6 = por %p1141_p5, %p1140_p4 }
   0xe   :  { %p1143_p7 = pnand %p1142_p6, %p1136_p3 }
  0x10   :  { %1146 = shalt.err (!%p1143_p7)
}
  0x11   :  { %24 = dma.hbm_to_vmem [thread:$0]  %s1465_s1, 128, %s22_s22, [#allocation4]  }
  0x12   :  { %s1147_s13 = scalar_lea.hbm %s1468_s4, 512 }
  0x13   :  { %p1148_p8 = scmp.ne.s32.totalorder %s1468_s4, %s1147_s13  ;;  %p1151_p9 = scmp.lt.u32.totalorder %s1147_s13, %s1468_s4 }
  0x15   :  { %p1153_p10 = pnand %p1151_p9, %p1148_p8 }
  0x17   :  { %1156 = shalt.err (!%p1153_p10)
}
  0x18   :  { %s1157_s18 = scalar_lea.vmem %s1215_s24, 512  ;;  %p1162_p12 = scmp.lt.s32.totalorder %s1215_s24, %s1215_s24 }
  0x19   :  { %p1158_p11 = scmp.ne.s32.totalorder %s1215_s24, %s1157_s18  ;;  %p1163_p13 = scmp.lt.s32.totalorder %s1157_s18, %s1157_s18 }
  0x1b   :  { %p1164_p0 = por %p1163_p13, %p1162_p12 }
  0x1d   :  { %p1165_p1 = pnand %p1164_p0, %p1158_p11 }
  0x1f   :  { %1168 = shalt.err (!%p1165_p1)
}
  0x20   :  { %s1175_s1 = smov 64   ;;  %s1176_s19 = smov 4  }
  0x21   :  { %40 = dma.hbm_to_vmem [thread:$0]  %s1468_s4, 512, %s1215_s24, [#allocation6], %s1175_s1, %s1175_s1, %s1176_s19  }
  0x22   :  { %1169 = dma.done.wait [#allocation4], 128  }
  0x23   :  { %1170 = vsyncadd [#allocation4], 4294967168 }
  0x24   :  { %1171 = dma.done.wait [#allocation6], 512  }
  0x25   :  { %1172 = vsyncadd [#allocation6], 4294966784  ;;  %v1177_v0 = vmov 0   ;;  %v1253_v1 = vld [vmem:[%s1466_s2 + $0x4] ss:$8 sps:$4 sm:$0xff]   ;;  %vm109_vm0 = vcmask 1043456   ;;  %v61_v14 = vlaneseq }
  0x26   :  { %148 = vmatprep.mubr.bf16.mxu0 %v1177_v0  ;;  %291 = vmatprep.mubr.bf16.mxu1 %v1177_v0  ;;  %v1258_v2 = vld [vmem:[%s1466_s2] ss:$8 sps:$4 sm:$0xff]   ;;  %v1264_v3 = vld [vmem:[%s1466_s2 + $0x14] ss:$8 sps:$4 sm:$0xff]   ;;  %v1270_v5 = vld [vmem:[%s1466_s2 + $0x10] ss:$8 sps:$4 sm:$0xff]  }
  0x27   :  { %259 = vmatprep.subr.bf16.mxu1 %v1253_v1  ;;  %v58_v4 = vld [vmem:[#allocation3] sm:$0xff]  ;;  %vm96_vm1 = vcmask 64512   ;;  %v1289_v12 = vld [vmem:[%s1466_s2 + $0x34] ss:$8 sps:$4 sm:$0xff]   ;;  %v1301_v13 = vld [vmem:[%s1466_s2 + $0x30] ss:$8 sps:$4 sm:$0xff]  }
  0x28   :  { %260 = vmatpush1.bf16.msra.mxu1 %v1258_v2  ;;  %v940_v6 = vcombine.high %v58_v4, %v58_v4  ;;  %v939_v7 = vcombine.low %v58_v4, %v58_v4  ;;  %v1276_v8 = vld [vmem:[%s1466_s2 + $0x24] ss:$8 sps:$4 sm:$0xff]   ;;  %v1284_v11 = vld [vmem:[%s1466_s2 + $0x20] ss:$8 sps:$4 sm:$0xff]   ;;  %v62_v15 = vshrl.u32 %v61_v14, 7  ;;  %vm255_vm2 = vcmask 523264  }
  0x29   :  { %261 = vmatprep.subr.bf16.mxu1 %v1264_v3  ;;  %v1018_v10 = vld [vmem:[%s1464_s0] sm:$0xff]   ;;  %v1022_v4 = vld [vmem:[%s1464_s0 + $0x8] sm:$0xff]   ;;  %vm1179_vm3 = vmmov 0  }
  0x2a   :  { %941 = vmatprep.subr.msk.bf16.mxu0 %vm109_vm0, %v940_v6  ;;  %v111_v9 = vsel %vm109_vm0, %v939_v7, 0  ;;  %v63_v16 = vsub.s32 0, %v62_v15  ;;  %v59_v17 = vld [vmem:[%s1467_s3] sm:$0x3]  ;;  %v67_v18 = vsub.s32 1, %v62_v15  ;;  %v1023_v6 = vld [vmem:[%s1464_s0 + $0x10] sm:$0xff]  }
  0x2b   :  { %117 = vmatpush1.bf16.msra.mxu0 %v111_v9  ;;  %v1024_v7 = vld [vmem:[%s1464_s0 + $0x18] sm:$0xff]  }
  0x2c   :  { %262 = vmatpush1.bf16.msra.mxu1 %v1270_v5  ;;  %407 = vmatprep.subr.bf16.mxu0 %v1253_v1  ;;  %v1326_v21 = vrot.slane %v59_v17, %v63_v16  ;;  %v1328_v23 = vrot.slane %v59_v17, %v67_v18 }
  0x2d   :  { %263 = vmatprep.subr.bf16.mxu1 %v1276_v8 }
  0x2e   :  { %942 = vmatmul.mubr.msk.bf16.vlgmr.msra.gmra.mrb[0].mxu0 %vm96_vm1, %v1018_v10 }
  0x2f   :  { %408 = vmatpush1.bf16.msra.mxu0 %v1258_v2  ;;  %158 = vmatprep.mubr.bf16.mxu0 %v1177_v0 }
  0x30   :  { %264 = vmatpush1.bf16.msra.mxu1 %v1284_v11  ;;  %409 = vmatprep.subr.bf16.mxu0 %v1264_v3 }
  0x31   :  { %265 = vmatprep.subr.bf16.mxu1 %v1289_v12 }
  0x33   :  { %410 = vmatpush1.bf16.msra.mxu0 %v1270_v5 }
  0x34   :  { %266 = vmatpush1.bf16.msra.mxu1 %v1301_v13  ;;  %411 = vmatprep.subr.bf16.mxu0 %v1276_v8 }
  0x35   :  { %333 = vmatprep.subr.bf16.mxu1 %v1253_v1 }
  0x36   :  { %943 = vmatmul.mubr.msk.bf16.gmra.mrb[4].mxu0 %vm96_vm1, %v1022_v4 }
  0x37   :  { %292 = vmatmul.mubr.bf16.vlgmr.msra.gmra.mrb[0].mxu1 %v1177_v0  ;;  %412 = vmatpush1.bf16.msra.mxu0 %v1284_v11 }
  0x38   :  { %334 = vmatpush1.bf16.msra.mxu1 %v1258_v2  ;;  %365 = vmatprep.mubr.bf16.mxu1 %v1177_v0 }
  0x39   :  { %335 = vmatprep.subr.bf16.mxu1 %v1264_v3  ;;  %413 = vmatprep.subr.bf16.mxu0 %v1289_v12 }
  0x3a   :  { %168 = vmatprep.mubr.bf16.mxu0 %v1177_v0 }
  0x3b   :  { %414 = vmatpush1.bf16.msra.mxu0 %v1301_v13 }
  0x3c   :  { %336 = vmatpush1.bf16.msra.mxu1 %v1270_v5  ;;  %555 = vmatprep.subr.bf16.mxu0 %v1253_v1 }
  0x3d   :  { %337 = vmatprep.subr.bf16.mxu1 %v1276_v8 }
  0x3e   :  { %944 = vmatmul.mubr.msk.bf16.gmra.mrb[8].mxu0 %vm96_vm1, %v1023_v6 }
  0x3f   :  { %178 = vmatprep.mubr.bf16.mxu0 %v1177_v0 }
  0x40   :  { %338 = vmatpush1.bf16.msra.mxu1 %v1284_v11 }
  0x41   :  { %339 = vmatprep.subr.bf16.mxu1 %v1289_v12 }
  0x44   :  { %340 = vmatpush1.bf16.msra.mxu1 %v1301_v13 }
  0x45   :  { %481 = vmatprep.subr.bf16.mxu1 %v1253_v1 }
  0x46   :  { %945 = vmatmul.mubr.msk.bf16.gmra.mrb[12].mxu0 %vm96_vm1, %v1024_v7 }
  0x47   :  { %439 = vmatprep.mubr.bf16.mxu0 %v1177_v0 }
 0x101   :  { %v150_v19 = vpop.f32.mrb[0].mxu0 }
 0x102   :  { %v152_v20 = vpop.f32.mrb[1].mxu0  ;;  %v151_v25 = vadd.f32 %v150_v19, %v1326_v21 }
 0x103   :  { %v154_v22 = vpop.f32.mrb[2].mxu0  ;;  %v153_v26 = vadd.f32 %v152_v20, %v1328_v23 }
 0x104   :  { %v156_v24 = vpop.f32.mrb[3].mxu0  ;;  %v155_v50 = vadd.f32 %v154_v22, %v1326_v21 }
 0x105   :  { %v157_v51 = vadd.f32 %v156_v24, %v1328_v23 }
 0x109   :  { %v160_v24 = vpop.f32.mrb[4].mxu0 }
 0x10a   :  { %v293_v27 = vpop.f32.mrb[0].mxu1 }
 0x10b   :  { %v300_v28 = vadd.f32 %v293_v27, %v151_v25  ;;  %v295_v29 = vpop.f32.mrb[1].mxu1  ;;  %v162_v25 = vpop.f32.mrb[5].mxu0 }
 0x10c   :  { %v301_v30 = vadd.f32 %v295_v29, %v153_v26  ;;  %v297_v31 = vpop.f32.mrb[2].mxu1  ;;  %v1363_v26 = vpop.f32.mrb[6].mxu0 }
 0x10d   :  { %v954_v32 = vmul.f32 -1.442695, %v300_v28  ;;  %v298_v33 = vpop.f32.mrb[3].mxu1  ;;  %v1365_v27 = vpop.f32.mrb[7].mxu0 }
 0x10e   :  { %v955_v39 = vmul.f32 -1.442695, %v301_v30 }
 0x10f   :  { %1029 = vpow2.f32 %v954_v32 }
 0x110   :  { %1031 = vtanh.f32 %v301_v30 }
 0x111   :  { %v1367_v28 = vpop.f32.mrb[8].mxu0 }
 0x112   :  { %v1369_v29 = vpop.f32.mrb[9].mxu0 }
 0x113   :  { %v1371_v30 = vpop.f32.mrb[10].mxu0 }
 0x114   :  { %v1373_v31 = vpop.f32.mrb[11].mxu0 }
 0x119   :  { %v1030_v34 = vpop.eup %1029  ;;  %v1375_v32 = vpop.f32.mrb[12].mxu0 }
 0x11a   :  { %v305_v35 = vadd.f32 1.0, %v1030_v34  ;;  %v1032_v36 = vpop.eup %1031  ;;  %v1377_v33 = vpop.f32.mrb[13].mxu0 }
 0x11b   :  { %v1379_v34 = vpop.f32.mrb[14].mxu0 }
 0x11c   :  { %1033 = vrcp.f32 %v305_v35  ;;  %v1381_v35 = vpop.f32.mrb[15].mxu0 }
 0x11d   :  { %1035 = vpow2.f32 %v955_v39 }
 0x126   :  { %v1034_v37 = vpop.eup %1033 }
 0x127   :  { %v316_v38 = vmul.f32 %v1034_v37, %v1032_v36  ;;  %v1036_v40 = vpop.eup %1035  ;;  %v315_v42 = vmul.f32 0.0, %v1034_v37  ;;  %v161_v37 = vadd.f32 %v160_v24, %v1326_v21 }
 0x128   :  { %v312_v41 = vadd.f32 1.0, %v1036_v40 }
 0x129   :  { %318 = vrot.lane.b32.xlu0 %v316_v38, %s1175_s1  ;;  %v163_v38 = vadd.f32 %v162_v25, %v1328_v23 }
 0x12a   :  { %1037 = vrcp.f32 %v312_v41 }
 0x134   :  { %v1038_v45 = vpop.eup %1037 }
 0x19b   :  { %v319_v43 = vpop.permute.xlu0 %318 }
 0x19c   :  { %v321_v44 = vadd.f32 %v319_v43, %v315_v42 }
 0x19e   :  { %1039 = vtanh.f32 %v321_v44 }
 0x1a8   :  { %v1040_v46 = vpop.eup %1039 }
 0x1a9   :  { %v323_v47 = vmul.f32 %v1040_v46, %v1038_v45 }
 0x1ab   :  { %v326_v48 = vpack.c.bf16 %v323_v47, %v323_v47 }
 0x1ad   :  { %328 = vrot.lane.b32.xlu0 %v326_v48, %s1175_s1 }
 0x21f   :  { %v329_v49 = vpop.permute.xlu0 %328 }
 0x220   :  { %956 = vmatmul.mubr.msk.bf16.vlgmr.msra.gmra.mrb[4].mxu1 %vm255_vm2, %v329_v49 }
 0x221   :  { %482 = vmatpush1.bf16.msra.mxu1 %v1258_v2  ;;  %513 = vmatprep.mubr.bf16.mxu1 %v1177_v0 }
 0x222   :  { %483 = vmatprep.subr.bf16.mxu1 %v1264_v3 }
 0x225   :  { %484 = vmatpush1.bf16.msra.mxu1 %v1270_v5 }
 0x226   :  { %485 = vmatprep.subr.bf16.mxu1 %v1276_v8 }
 0x229   :  { %486 = vmatpush1.bf16.msra.mxu1 %v1284_v11 }
 0x22a   :  { %487 = vmatprep.subr.bf16.mxu1 %v1289_v12 }
 0x22d   :  { %488 = vmatpush1.bf16.msra.mxu1 %v1301_v13 }
 0x22e   :  { %629 = vmatprep.subr.bf16.mxu1 %v1253_v1 }
 0x2f3   :  { %v367_v52 = vpop.f32.mrb[4].mxu1 }
 0x2f4   :  { %v374_v53 = vadd.f32 %v367_v52, %v155_v50  ;;  %v369_v54 = vpop.f32.mrb[5].mxu1 }
 0x2f5   :  { %v375_v55 = vadd.f32 %v369_v54, %v157_v51  ;;  %v371_v56 = vpop.f32.mrb[6].mxu1 }
 0x2f6   :  { %v957_v57 = vmul.f32 -1.442695, %v374_v53  ;;  %v372_v58 = vpop.f32.mrb[7].mxu1 }
 0x2f7   :  { %v958_v9 = vmul.f32 -1.442695, %v375_v55 }
 0x2f8   :  { %1041 = vpow2.f32 %v957_v57 }
 0x2f9   :  { %1043 = vtanh.f32 %v375_v55 }
 0x302   :  { %v1042_v59 = vpop.eup %1041 }
 0x303   :  { %v379_v60 = vadd.f32 1.0, %v1042_v59  ;;  %v1044_v61 = vpop.eup %1043 }
 0x305   :  { %1045 = vrcp.f32 %v379_v60 }
 0x306   :  { %1047 = vpow2.f32 %v958_v9 }
 0x30f   :  { %v1046_v62 = vpop.eup %1045 }
 0x310   :  { %v390_v63 = vmul.f32 %v1046_v62, %v1044_v61  ;;  %v1048_v10 = vpop.eup %1047  ;;  %v389_v15 = vmul.f32 %v1046_v62, %v321_v44  ;;  %v165_v62 = vadd.f32 %v1363_v26, %v1326_v21 }
 0x311   :  { %v386_v14 = vadd.f32 1.0, %v1048_v10 }
 0x312   :  { %392 = vrot.lane.b32.xlu1 %v390_v63, %s1175_s1  ;;  %v167_v63 = vadd.f32 %v1365_v27, %v1328_v23 }
 0x313   :  { %1049 = vrcp.f32 %v386_v14 }
 0x31d   :  { %v1050_v18 = vpop.eup %1049 }
 0x384   :  { %v393_v16 = vpop.permute.xlu1 %392 }
 0x385   :  { %v395_v17 = vadd.f32 %v393_v16, %v389_v15 }
 0x387   :  { %1051 = vtanh.f32 %v395_v17 }
 0x391   :  { %v1052_v19 = vpop.eup %1051 }
 0x392   :  { %v397_v20 = vmul.f32 %v1052_v19, %v1050_v18 }
 0x394   :  { %v400_v22 = vpack.c.bf16 %v397_v20, %v397_v20 }
 0x396   :  { %402 = vrot.lane.b32.xlu1 %v400_v22, %s1175_s1 }
 0x408   :  { %v403_v36 = vpop.permute.xlu1 %402 }
 0x409   :  { %959 = vmatmul.mubr.msk.bf16.vlgmr.msra.gmra.mrb[16].mxu0 %vm255_vm2, %v403_v36 }
 0x40a   :  { %556 = vmatpush1.bf16.msra.mxu0 %v1258_v2  ;;  %587 = vmatprep.mubr.bf16.mxu0 %v1177_v0 }
 0x40b   :  { %557 = vmatprep.subr.bf16.mxu0 %v1264_v3 }
 0x40e   :  { %558 = vmatpush1.bf16.msra.mxu0 %v1270_v5 }
 0x40f   :  { %559 = vmatprep.subr.bf16.mxu0 %v1276_v8 }
 0x412   :  { %560 = vmatpush1.bf16.msra.mxu0 %v1284_v11 }
 0x413   :  { %561 = vmatprep.subr.bf16.mxu0 %v1289_v12 }
 0x416   :  { %562 = vmatpush1.bf16.msra.mxu0 %v1301_v13 }
 0x417   :  { %703 = vmatprep.subr.bf16.mxu0 %v1253_v1 }
 0x4dc   :  { %v441_v39 = vpop.f32.mrb[16].mxu0 }
 0x4dd   :  { %v448_v40 = vadd.f32 %v441_v39, %v161_v37  ;;  %v443_v41 = vpop.f32.mrb[17].mxu0 }
 0x4de   :  { %v449_v42 = vadd.f32 %v443_v41, %v163_v38  ;;  %v445_v43 = vpop.f32.mrb[18].mxu0  ;;  %v171_v41 = vadd.f32 %v1367_v28, %v1326_v21 }
 0x4df   :  { %v960_v44 = vmul.f32 -1.442695, %v448_v40  ;;  %v446_v45 = vpop.f32.mrb[19].mxu0 }
 0x4e0   :  { %v961_v51 = vmul.f32 -1.442695, %v449_v42 }
 0x4e1   :  { %1053 = vpow2.f32 %v960_v44 }
 0x4e2   :  { %1055 = vtanh.f32 %v449_v42  ;;  %v173_v42 = vadd.f32 %v1369_v29, %v1328_v23 }
 0x4eb   :  { %v1054_v46 = vpop.eup %1053 }
 0x4ec   :  { %v453_v47 = vadd.f32 1.0, %v1054_v46  ;;  %v1056_v48 = vpop.eup %1055 }
 0x4ee   :  { %1057 = vrcp.f32 %v453_v47 }
 0x4ef   :  { %1059 = vpow2.f32 %v961_v51 }
 0x4f8   :  { %v1058_v49 = vpop.eup %1057 }
 0x4f9   :  { %v464_v50 = vmul.f32 %v1058_v49, %v1056_v48  ;;  %v1060_v52 = vpop.eup %1059  ;;  %v463_v54 = vmul.f32 %v1058_v49, %v395_v17 }
 0x4fa   :  { %v460_v53 = vadd.f32 1.0, %v1060_v52 }
 0x4fb   :  { %466 = vrot.lane.b32.xlu0 %v464_v50, %s1175_s1 }
 0x4fc   :  { %1061 = vrcp.f32 %v460_v53 }
 0x506   :  { %v1062_v57 = vpop.eup %1061 }
 0x56d   :  { %v467_v55 = vpop.permute.xlu0 %466 }
 0x56e   :  { %v469_v56 = vadd.f32 %v467_v55, %v463_v54 }
 0x570   :  { %1063 = vtanh.f32 %v469_v56 }
 0x57a   :  { %v1064_v58 = vpop.eup %1063 }
 0x57b   :  { %v471_v59 = vmul.f32 %v1064_v58, %v1062_v57 }
 0x57d   :  { %v474_v60 = vpack.c.bf16 %v471_v59, %v471_v59 }
 0x57f   :  { %476 = vrot.lane.b32.xlu1 %v474_v60, %s1175_s1 }
 0x5f1   :  { %v477_v61 = vpop.permute.xlu1 %476 }
 0x5f2   :  { %962 = vmatmul.mubr.msk.bf16.vlgmr.msra.gmra.mrb[8].mxu1 %vm255_vm2, %v477_v61 }
 0x5f3   :  { %630 = vmatpush1.bf16.msra.mxu1 %v1258_v2  ;;  %661 = vmatprep.mubr.bf16.mxu1 %v1177_v0 }
 0x5f4   :  { %631 = vmatprep.subr.bf16.mxu1 %v1264_v3 }
 0x5f7   :  { %632 = vmatpush1.bf16.msra.mxu1 %v1270_v5 }
 0x5f8   :  { %633 = vmatprep.subr.bf16.mxu1 %v1276_v8 }
 0x5fb   :  { %634 = vmatpush1.bf16.msra.mxu1 %v1284_v11 }
 0x5fc   :  { %635 = vmatprep.subr.bf16.mxu1 %v1289_v12 }
 0x5ff   :  { %636 = vmatpush1.bf16.msra.mxu1 %v1301_v13 }
 0x600   :  { %777 = vmatprep.subr.bf16.mxu1 %v1253_v1 }
 0x6c5   :  { %v515_v4 = vpop.f32.mrb[8].mxu1 }
 0x6c6   :  { %v522_v6 = vadd.f32 %v515_v4, %v165_v62  ;;  %v517_v7 = vpop.f32.mrb[9].mxu1  ;;  %v175_v4 = vadd.f32 %v1371_v30, %v1326_v21 }
 0x6c7   :  { %v523_v9 = vadd.f32 %v517_v7, %v167_v63  ;;  %v519_v10 = vpop.f32.mrb[10].mxu1 }
 0x6c8   :  { %v963_v14 = vmul.f32 -1.442695, %v522_v6  ;;  %v520_v15 = vpop.f32.mrb[11].mxu1 }
 0x6c9   :  { %v964_v20 = vmul.f32 -1.442695, %v523_v9 }
 0x6ca   :  { %1065 = vpow2.f32 %v963_v14 }
 0x6cb   :  { %1067 = vtanh.f32 %v523_v9 }
 0x6d4   :  { %v1066_v16 = vpop.eup %1065 }
 0x6d5   :  { %v527_v17 = vadd.f32 1.0, %v1066_v16  ;;  %v1068_v18 = vpop.eup %1067 }
 0x6d7   :  { %1069 = vrcp.f32 %v527_v17 }
 0x6d8   :  { %1071 = vpow2.f32 %v964_v20 }
 0x6e1   :  { %v1070_v1 = vpop.eup %1069 }
 0x6e2   :  { %v538_v19 = vmul.f32 %v1070_v1, %v1068_v18  ;;  %v1072_v22 = vpop.eup %1071  ;;  %v537_v25 = vmul.f32 %v1070_v1, %v469_v56 }
 0x6e3   :  { %v534_v24 = vadd.f32 1.0, %v1072_v22 }
 0x6e4   :  { %540 = vrot.lane.b32.xlu0 %v538_v19, %s1175_s1 }
 0x6e5   :  { %1073 = vrcp.f32 %v534_v24 }
 0x6ef   :  { %v1074_v36 = vpop.eup %1073 }
 0x756   :  { %v541_v26 = vpop.permute.xlu0 %540 }
 0x757   :  { %v543_v27 = vadd.f32 %v541_v26, %v537_v25  ;;  %v181_v25 = vadd.f32 %v1375_v32, %v1326_v21  ;;  %v183_v26 = vadd.f32 %v1377_v33, %v1328_v23 }
 0x759   :  { %1075 = vtanh.f32 %v543_v27 }
 0x763   :  { %v1076_v37 = vpop.eup %1075 }
 0x764   :  { %v545_v38 = vmul.f32 %v1076_v37, %v1074_v36 }
 0x766   :  { %v548_v39 = vpack.c.bf16 %v545_v38, %v545_v38 }
 0x768   :  { %550 = vrot.lane.b32.xlu1 %v548_v39, %s1175_s1 }
 0x7da   :  { %v551_v40 = vpop.permute.xlu1 %550 }
 0x7db   :  { %965 = vmatmul.mubr.msk.bf16.vlgmr.msra.gmra.mrb[20].mxu0 %vm255_vm2, %v551_v40 }
 0x7dc   :  { %704 = vmatpush1.bf16.msra.mxu0 %v1258_v2  ;;  %735 = vmatprep.mubr.bf16.mxu0 %v1177_v0 }
 0x7dd   :  { %705 = vmatprep.subr.bf16.mxu0 %v1264_v3 }
 0x7e0   :  { %706 = vmatpush1.bf16.msra.mxu0 %v1270_v5 }
 0x7e1   :  { %707 = vmatprep.subr.bf16.mxu0 %v1276_v8 }
 0x7e4   :  { %708 = vmatpush1.bf16.msra.mxu0 %v1284_v11 }
 0x7e5   :  { %709 = vmatprep.subr.bf16.mxu0 %v1289_v12 }
 0x7e8   :  { %710 = vmatpush1.bf16.msra.mxu0 %v1301_v13 }
 0x8ae   :  { %v589_v43 = vpop.f32.mrb[20].mxu0 }
 0x8af   :  { %v596_v44 = vadd.f32 %v589_v43, %v171_v41  ;;  %v591_v45 = vpop.f32.mrb[21].mxu0 }
 0x8b0   :  { %v597_v46 = vadd.f32 %v591_v45, %v173_v42  ;;  %v593_v47 = vpop.f32.mrb[22].mxu0 }
 0x8b1   :  { %v966_v48 = vmul.f32 -1.442695, %v596_v44  ;;  %v594_v49 = vpop.f32.mrb[23].mxu0 }
 0x8b2   :  { %v967_v28 = vmul.f32 -1.442695, %v597_v46 }
 0x8b3   :  { %1077 = vpow2.f32 %v966_v48 }
 0x8b4   :  { %1079 = vtanh.f32 %v597_v46 }
 0x8bd   :  { %v1078_v50 = vpop.eup %1077 }
 0x8be   :  { %v601_v51 = vadd.f32 1.0, %v1078_v50  ;;  %v1080_v52 = vpop.eup %1079 }
 0x8c0   :  { %1081 = vrcp.f32 %v601_v51 }
 0x8c1   :  { %1083 = vpow2.f32 %v967_v28 }
 0x8ca   :  { %v1082_v53 = vpop.eup %1081 }
 0x8cb   :  { %v612_v54 = vmul.f32 %v1082_v53, %v1080_v52  ;;  %v1084_v29 = vpop.eup %1083  ;;  %v611_v56 = vmul.f32 %v1082_v53, %v543_v27 }
 0x8cc   :  { %v608_v55 = vadd.f32 1.0, %v1084_v29  ;;  %v185_v29 = vadd.f32 %v1379_v34, %v1326_v21  ;;  %v1025_v21 = vld [vmem:[#allocation5] sm:$0xff]   ;;  %v1178_v34 = vmov 0.0  }
 0x8cd   :  { %614 = vrot.lane.b32.xlu0 %v612_v54, %s1175_s1  ;;  %988 = vmatprep.subr.bf16.mxu0 %v1178_v34 }
 0x8ce   :  { %1085 = vrcp.f32 %v608_v55  ;;  %v187_v55 = vadd.f32 %v1381_v35, %v1328_v23  ;;  %v1027_v35 = vld [vmem:[#allocation5 + $0x10] sm:$0xff]  }
 0x8d8   :  { %v1086_v59 = vpop.eup %1085 }
 0x93f   :  { %v615_v57 = vpop.permute.xlu0 %614 }
 0x940   :  { %v617_v58 = vadd.f32 %v615_v57, %v611_v56 }
 0x942   :  { %1087 = vtanh.f32 %v617_v58 }
 0x94c   :  { %v1088_v60 = vpop.eup %1087 }
 0x94d   :  { %v619_v61 = vmul.f32 %v1088_v60, %v1086_v59 }
 0x94f   :  { %v622_v62 = vpack.c.bf16 %v619_v61, %v619_v61 }
 0x951   :  { %624 = vrot.lane.b32.xlu1 %v622_v62, %s1175_s1 }
 0x9c3   :  { %v625_v63 = vpop.permute.xlu1 %624 }
 0x9c4   :  { %968 = vmatmul.mubr.msk.bf16.vlgmr.msra.gmra.mrb[12].mxu1 %vm255_vm2, %v625_v63 }
 0x9c5   :  { %778 = vmatpush1.bf16.msra.mxu1 %v1258_v2  ;;  %809 = vmatprep.mubr.bf16.mxu1 %v1177_v0  ;;  %v177_v2 = vadd.f32 %v1373_v31, %v1328_v23  ;;  %v1026_v23 = vld [vmem:[#allocation5 + $0x8] sm:$0xff]  }
 0x9c6   :  { %779 = vmatprep.subr.bf16.mxu1 %v1264_v3 }
 0x9c9   :  { %780 = vmatpush1.bf16.msra.mxu1 %v1270_v5 }
 0x9ca   :  { %781 = vmatprep.subr.bf16.mxu1 %v1276_v8 }
 0x9cd   :  { %782 = vmatpush1.bf16.msra.mxu1 %v1284_v11 }
 0x9ce   :  { %783 = vmatprep.subr.bf16.mxu1 %v1289_v12 }
 0x9d1   :  { %784 = vmatpush1.bf16.msra.mxu1 %v1301_v13 }
 0xa97   :  { %v663_v6 = vpop.f32.mrb[12].mxu1 }
 0xa98   :  { %v670_v0 = vadd.f32 %v663_v6, %v175_v4  ;;  %v665_v7 = vpop.f32.mrb[13].mxu1 }
 0xa99   :  { %v671_v3 = vadd.f32 %v665_v7, %v177_v2  ;;  %v667_v9 = vpop.f32.mrb[14].mxu1  ;;  %v1028_v7 = vld [vmem:[#allocation5 + $0x18] sm:$0xff]  }
 0xa9a   :  { %v969_v5 = vmul.f32 -1.442695, %v670_v0  ;;  %v668_v10 = vpop.f32.mrb[15].mxu1 }
 0xa9b   :  { %v970_v30 = vmul.f32 -1.442695, %v671_v3 }
 0xa9c   :  { %1089 = vpow2.f32 %v969_v5 }
 0xa9d   :  { %1091 = vtanh.f32 %v671_v3 }
 0xaa6   :  { %v1090_v8 = vpop.eup %1089 }
 0xaa7   :  { %v675_v11 = vadd.f32 1.0, %v1090_v8  ;;  %v1092_v12 = vpop.eup %1091 }
 0xaa9   :  { %1093 = vrcp.f32 %v675_v11 }
 0xaaa   :  { %1095 = vpow2.f32 %v970_v30 }
 0xab3   :  { %v1094_v13 = vpop.eup %1093 }
 0xab4   :  { %v686_v14 = vmul.f32 %v1094_v13, %v1092_v12  ;;  %v1096_v31 = vpop.eup %1095  ;;  %v685_v16 = vmul.f32 %v1094_v13, %v617_v58 }
 0xab5   :  { %v682_v15 = vadd.f32 1.0, %v1096_v31 }
 0xab6   :  { %688 = vrot.lane.b32.xlu0 %v686_v14, %s1175_s1 }
 0xab7   :  { %1097 = vrcp.f32 %v682_v15  ;;  %v977_v15 = vld [vmem:[%s1469_s5] ss:$0 sm:$0xff] }
 0xac1   :  { %v1098_v1 = vpop.eup %1097 }
 0xb28   :  { %v689_v17 = vpop.permute.xlu0 %688 }
 0xb29   :  { %v691_v18 = vadd.f32 %v689_v17, %v685_v16 }
 0xb2b   :  { %1099 = vtanh.f32 %v691_v18 }
 0xb35   :  { %v1100_v19 = vpop.eup %1099 }
 0xb36   :  { %v693_v20 = vmul.f32 %v1100_v19, %v1098_v1 }
 0xb38   :  { %v696_v22 = vpack.c.bf16 %v693_v20, %v693_v20 }
 0xb3a   :  { %698 = vrot.lane.b32.xlu1 %v696_v22, %s1175_s1 }
 0xbac   :  { %v699_v24 = vpop.permute.xlu1 %698 }
 0xbad   :  { %971 = vmatmul.mubr.msk.bf16.vlgmr.msra.gmra.mrb[24].mxu0 %vm255_vm2, %v699_v24 }
 0xbae   :  { %996 = vmatprep.mubr.msk.bf16.mxu0 %vm1179_vm3, %v1178_v34  ;;  %989 = vmatpush3.bf16.msra.mxu0 %v1025_v21 }
 0xbaf   :  { %990 = vmatprep.subr.bf16.mxu0 %v1178_v34 }
 0xbb2   :  { %991 = vmatpush3.bf16.msra.mxu0 %v1026_v23 }
 0xbb3   :  { %992 = vmatprep.subr.bf16.mxu0 %v1178_v34 }
 0xbb6   :  { %993 = vmatpush3.bf16.msra.mxu0 %v1027_v35 }
 0xbb7   :  { %994 = vmatprep.subr.bf16.mxu0 %v1178_v34 }
 0xbba   :  { %995 = vmatpush3.bf16.msra.mxu0 %v1028_v7 }
 0xc80   :  { %v737_v27 = vpop.f32.mrb[24].mxu0 }
 0xc81   :  { %v744_v36 = vadd.f32 %v737_v27, %v181_v25  ;;  %v739_v37 = vpop.f32.mrb[25].mxu0 }
 0xc82   :  { %v745_v38 = vadd.f32 %v739_v37, %v183_v26  ;;  %v741_v39 = vpop.f32.mrb[26].mxu0 }
 0xc83   :  { %v972_v40 = vmul.f32 -1.442695, %v744_v36  ;;  %v742_v41 = vpop.f32.mrb[27].mxu0 }
 0xc84   :  { %v973_v32 = vmul.f32 -1.442695, %v745_v38 }
 0xc85   :  { %1101 = vpow2.f32 %v972_v40 }
 0xc86   :  { %1103 = vtanh.f32 %v745_v38 }
 0xc8f   :  { %v1102_v42 = vpop.eup %1101 }
 0xc90   :  { %v749_v43 = vadd.f32 1.0, %v1102_v42  ;;  %v1104_v44 = vpop.eup %1103 }
 0xc92   :  { %1105 = vrcp.f32 %v749_v43 }
 0xc93   :  { %1107 = vpow2.f32 %v973_v32 }
 0xc9c   :  { %v1106_v45 = vpop.eup %1105 }
 0xc9d   :  { %v760_v46 = vmul.f32 %v1106_v45, %v1104_v44  ;;  %v1108_v33 = vpop.eup %1107  ;;  %v759_v48 = vmul.f32 %v1106_v45, %v691_v18 }
 0xc9e   :  { %v756_v47 = vadd.f32 1.0, %v1108_v33 }
 0xc9f   :  { %762 = vrot.lane.b32.xlu0 %v760_v46, %s1175_s1 }
 0xca0   :  { %1109 = vrcp.f32 %v756_v47 }
 0xcaa   :  { %v1110_v51 = vpop.eup %1109 }
 0xd11   :  { %v763_v49 = vpop.permute.xlu0 %762 }
 0xd12   :  { %v765_v50 = vadd.f32 %v763_v49, %v759_v48 }
 0xd14   :  { %1111 = vtanh.f32 %v765_v50 }
 0xd1e   :  { %v1112_v52 = vpop.eup %1111 }
 0xd1f   :  { %v767_v53 = vmul.f32 %v1112_v52, %v1110_v51 }
 0xd21   :  { %v770_v54 = vpack.c.bf16 %v767_v53, %v767_v53 }
 0xd23   :  { %772 = vrot.lane.b32.xlu1 %v770_v54, %s1175_s1 }
 0xd95   :  { %v773_v28 = vpop.permute.xlu1 %772 }
 0xd96   :  { %974 = vmatmul.mubr.msk.bf16.vlgmr.msra.gmra.mrb[16].mxu1 %vm255_vm2, %v773_v28 }
 0xe69   :  { %v811_v56 = vpop.f32.mrb[16].mxu1 }
 0xe6a   :  { %v818_v57 = vadd.f32 %v811_v56, %v185_v29  ;;  %v813_v58 = vpop.f32.mrb[17].mxu1 }
 0xe6b   :  { %v819_v59 = vadd.f32 %v813_v58, %v187_v55  ;;  %v815_v60 = vpop.f32.mrb[18].mxu1 }
 0xe6c   :  { %v975_v61 = vmul.f32 -1.442695, %v818_v57  ;;  %v816_v62 = vpop.f32.mrb[19].mxu1 }
 0xe6d   :  { %v976_v3 = vmul.f32 -1.442695, %v819_v59 }
 0xe6e   :  { %1113 = vpow2.f32 %v975_v61 }
 0xe6f   :  { %1115 = vtanh.f32 %v819_v59 }
 0xe78   :  { %v1114_v63 = vpop.eup %1113 }
 0xe79   :  { %v823_v4 = vadd.f32 1.0, %v1114_v63  ;;  %v1116_v2 = vpop.eup %1115 }
 0xe7b   :  { %1117 = vrcp.f32 %v823_v4 }
 0xe7c   :  { %1119 = vpow2.f32 %v976_v3 }
 0xe85   :  { %v1118_v6 = vpop.eup %1117 }
 0xe86   :  { %v834_v0 = vmul.f32 %v1118_v6, %v1116_v2  ;;  %v1120_v9 = vpop.eup %1119  ;;  %v833_v10 = vmul.f32 %v1118_v6, %v765_v50 }
 0xe87   :  { %v830_v5 = vadd.f32 1.0, %v1120_v9 }
 0xe88   :  { %836 = vrot.lane.b32.xlu0 %v834_v0, %s1175_s1 }
 0xe89   :  { %1121 = vrcp.f32 %v830_v5 }
 0xe93   :  { %v1122_v12 = vpop.eup %1121 }
 0xefa   :  { %v837_v8 = vpop.permute.xlu0 %836 }
 0xefb   :  { %v839_v11 = vadd.f32 %v837_v8, %v833_v10 }
 0xefd   :  { %1123 = vtanh.f32 %v839_v11 }
 0xf07   :  { %v1124_v13 = vpop.eup %1123 }
 0xf08   :  { %v841_v14 = vmul.f32 %v1124_v13, %v1122_v12 }
 0xf0a   :  { %v842_v30 = vpack.c.bf16 %v841_v14, %v841_v14 }
 0xf0c   :  { %859 = vrot.lane.b32.xlu1 %v842_v30, %s1175_s1 }
 0xf7e   :  { %v860_v31 = vpop.permute.xlu1 %859 }
 0xf7f   :  { %997 = vmatmul.mubr.msk.bf16.vlgmr.msra.gmra.mrb[28].mxu0 %vm255_vm2, %v860_v31 }
0x1052   :  { %v922_v16 = vpop.f32.mrb[28].mxu0 }
0x1053   :  { %v923_v17 = vadd.f32 %v977_v15, %v922_v16  ;;  %v998_v18 = vpop.f32.mrb[29].mxu0 }
0x1054   :  { %v925_v1 = vpop.f32.mrb[30].mxu0 }
0x1055   :  { %928 = vst [vmem:[%s1470_s6] sm:$0xff] %v923_v17  ;;  %v999_v19 = vpop.f32.mrb[31].mxu0 }
0x1056   :  { %933 = vsyncpa [#allocation4], 1 }
0x1057   :  { %934 = vsyncpa [#allocation6], 1 }

</bundles_post_ra>
